<compile_context>
chip_gen: v5e
topology: v5e:2x2
jax: 0.10.0
libtpu: 0.0.40
codegen_flags: <defaults>
</compile_context>

<pallas_src>
import functools
import math

import jax
import jax.numpy as jnp
from jax.experimental import pallas as pl
from jax.experimental.pallas import tpu as pltpu


def _xlogx(p):
    """p * log(p) with the PyTorch KLDiv convention 0 * log(0) == 0."""
    return 0.0 if p <= 0.0 else float(p) * math.log(float(p))


def _smoothed_ce_kernel(x_ref, tgt_ref, out_ref, *, n_rows, coef_t, coef_sum):
    i = pl.program_id(0)

    x = x_ref[...].astype(jnp.float32)                 # (T, C) compute in f32
    t, c = x.shape
    tgt = tgt_ref[...]                                  # (T, 1) int32

    # log-softmax pieces without materializing logprobs:
    m = jnp.max(x, axis=-1, keepdims=True)              # (T, 1)
    shifted = x - m                                      # (T, C), only big temp
    lse = jnp.log(jnp.sum(jnp.exp(shifted), axis=-1, keepdims=True))   # (T, 1)

    # target logit (scatter replaced by iota-compare + row reduce)
    col = jax.lax.broadcasted_iota(jnp.int32, (t, c), 1)
    tgt_shift = jnp.sum(jnp.where(col == tgt, shifted, 0.0),
                        axis=-1, keepdims=True)          # (T, 1)
    sum_shift = jnp.sum(shifted, axis=-1, keepdims=True)  # (T, 1)

    lp_t = tgt_shift - lse                               # logprob at target
    sum_lp = sum_shift - jnp.float32(c) * lse            # sum_c logprob

    per_row = coef_t * lp_t + coef_sum * sum_lp          # (T, 1), K added later

    # mask rows past the true batch size (partial last tile)
    row = jax.lax.broadcasted_iota(jnp.int32, (t, 1), 0) + i * t
    out_ref[...] = jnp.where(row < n_rows, per_row, 0.0)


def _pick_tile_n(n, c, itemsize, target_bytes=2 * 1024 * 1024):
    """Batch-tile size: ~2 MiB per input buffer, multiple of 8 sublanes."""
    row_bytes = max(1, c * itemsize)
    t = target_bytes // row_bytes
    if t >= n:
        return int(n)
    return int(max(8, (t // 8) * 8))


def smoothed_cross_entropy_loss(x, target, smoothing=0.1, tile_n=None):
    """Training-mode forward of SmoothedCrossEntropyLoss.

    x:      (N, C) float logits (any float dtype; streamed at native width)
    target: (N,)   integer class ids (out-of-range ids give an all-smooth row)
    returns scalar float32 loss
    """
    n, c = x.shape
    confidence = 1.0 - smoothing
    smooth_val = smoothing / (c - 1) if c > 1 else 0.0
    # constant part of the KL term, guarded for smoothing in {0, 1} and C == 1
    k_const = _xlogx(confidence) + (c - 1) * _xlogx(smooth_val)
    coef_t = -(confidence - smooth_val)
    coef_sum = -smooth_val

    if tile_n is None:
        tile_n = _pick_tile_n(n, c, jnp.dtype(x.dtype).itemsize)
    tile_n = int(min(tile_n, n))
    num_tiles = pl.cdiv(n, tile_n)

    tgt = target.astype(jnp.int32).reshape(n, 1)

    x_spec = pl.BlockSpec((tile_n, c), lambda i: (i, 0))
    if num_tiles > 2:
        # deepen the input pipeline for real streaming shapes
        x_spec = pl.BlockSpec((tile_n, c), lambda i: (i, 0),
                              pipeline_mode=pl.Buffered(3))

    per_row = pl.pallas_call(
        functools.partial(
            _smoothed_ce_kernel,
            n_rows=n,
            coef_t=float(coef_t),
            coef_sum=float(coef_sum),
        ),
        out_shape=jax.ShapeDtypeStruct((n, 1), jnp.float32),
        grid=(num_tiles,),
        in_specs=[
            x_spec,
            pl.BlockSpec((tile_n, 1), lambda i: (i, 0)),
        ],
        out_specs=pl.BlockSpec((tile_n, 1), lambda i: (i, 0)),
        compiler_params=pltpu.CompilerParams(
            dimension_semantics=("parallel",)),
    )(x, tgt)

    return jnp.sum(per_row) / jnp.float32(n) + jnp.float32(k_const)


def _reference(x, target, smoothing=0.1):
    # Pure-JAX reference mirroring the PyTorch module.
    x = x.astype(jnp.float32)
    n, c = x.shape
    confidence = 1.0 - smoothing
    logprobs = jax.nn.log_softmax(x, axis=-1)
    true_dist = jnp.full((n, c), smoothing / (c - 1), dtype=jnp.float32)
    true_dist = true_dist.at[jnp.arange(n), target].set(confidence)
    kl = true_dist * (jnp.log(true_dist) - logprobs)
    return jnp.sum(kl) / n


if __name__ == "__main__":
    key = jax.random.PRNGKey(0)
    kx, kt, kx2, kt2 = jax.random.split(key, 4)

    # Small case: batch=8, classes=32 (single tile).
    N, C = 8, 32
    x = jax.random.normal(kx, (N, C), dtype=jnp.float32)
    target = jax.random.randint(kt, (N,), 0, C, dtype=jnp.int32)
    loss = smoothed_cross_entropy_loss(x, target, smoothing=0.1)
    jax.block_until_ready(loss)
    ref = _reference(x, target, smoothing=0.1)
    assert jnp.allclose(loss, ref, rtol=1e-5, atol=1e-5), (loss, ref)

    # Multi-tile case: batch tiling with a partial last tile, bf16 logits
    # streamed at native width, Buffered(3) pipelining.
    N2, C2 = 200, 128
    x2 = jax.random.normal(kx2, (N2, C2), dtype=jnp.float32).astype(jnp.bfloat16)
    t2 = jax.random.randint(kt2, (N2,), 0, C2, dtype=jnp.int32)
    loss2 = smoothed_cross_entropy_loss(x2, t2, smoothing=0.1, tile_n=64)
    jax.block_until_ready(loss2)
    ref2 = _reference(x2, t2, smoothing=0.1)
    assert jnp.allclose(loss2, ref2, rtol=1e-4, atol=1e-4), (loss2, ref2)

    print("KERNEL_OK")
</pallas_src>

<mosaic_0001>
module attributes {stable_mosaic.version = 11 : i64} {
  func.func @_smoothed_ce_kernel(%arg0: i32, %arg1: memref<8x32xf32, #tpu.memory_space<vmem>>, %arg2: memref<8x1xi32, #tpu.memory_space<vmem>>, %arg3: memref<8x1xf32, #tpu.memory_space<vmem>>) attributes {dimension_semantics = [#tpu.dimension_semantics<parallel>], iteration_bounds = array<i64: 1>, scalar_prefetch = 0 : i64, scratch_operands = 0 : i64, tpu.core_type = #tpu.core_type<tc>, window_params = [{transform_indices = @transform_0, window_bounds = array<i64: 8, 32>}, {transform_indices = @transform_1, window_bounds = array<i64: 8, 1>}, {transform_indices = @transform_2, window_bounds = array<i64: 8, 1>}]} {
    %c0 = arith.constant 0 : index
    %c0_0 = arith.constant 0 : index
    %0 = vector.load %arg1[%c0, %c0_0] : memref<8x32xf32, #tpu.memory_space<vmem>>, vector<8x32xf32>
    %c0_1 = arith.constant 0 : index
    %c0_2 = arith.constant 0 : index
    %1 = vector.load %arg2[%c0_1, %c0_2] : memref<8x1xi32, #tpu.memory_space<vmem>>, vector<8x1xi32>
    %cst = arith.constant dense<0xFF800000> : vector<8xf32>
    %2 = vector.multi_reduction <maximumf>, %0, %cst [1] : vector<8x32xf32> to vector<8xf32>
    %3 = vector.shape_cast %2 : vector<8xf32> to vector<8x1xf32>
    %4 = vector.broadcast %3 : vector<8x1xf32> to vector<8x32xf32>
    %5 = arith.subf %0, %4 : vector<8x32xf32>
    %6 = math.exp %5 : vector<8x32xf32>
    %cst_3 = arith.constant dense<0.000000e+00> : vector<8xf32>
    %7 = vector.multi_reduction <add>, %6, %cst_3 [1] : vector<8x32xf32> to vector<8xf32>
    %8 = vector.shape_cast %7 : vector<8xf32> to vector<8x1xf32>
    %9 = math.log %8 : vector<8x1xf32>
    %10 = tpu.iota {dimensions = array<i32: 1>} : vector<8x32xi32>
    %11 = vector.broadcast %1 : vector<8x1xi32> to vector<8x32xi32>
    %12 = arith.cmpi eq, %10, %11 : vector<8x32xi32>
    %cst_4 = arith.constant 0.000000e+00 : f32
    %13 = vector.broadcast %cst_4 : f32 to vector<8x32xf32>
    %14 = arith.select %12, %5, %13 : vector<8x32xi1>, vector<8x32xf32>
    %cst_5 = arith.constant dense<0.000000e+00> : vector<8xf32>
    %15 = vector.multi_reduction <add>, %14, %cst_5 [1] : vector<8x32xf32> to vector<8xf32>
    %16 = vector.shape_cast %15 : vector<8xf32> to vector<8x1xf32>
    %cst_6 = arith.constant dense<0.000000e+00> : vector<8xf32>
    %17 = vector.multi_reduction <add>, %5, %cst_6 [1] : vector<8x32xf32> to vector<8xf32>
    %18 = vector.shape_cast %17 : vector<8xf32> to vector<8x1xf32>
    %19 = arith.subf %16, %9 : vector<8x1xf32>
    %cst_7 = arith.constant 3.200000e+01 : f32
    %20 = vector.broadcast %cst_7 : f32 to vector<8x1xf32>
    %21 = arith.mulf %20, %9 : vector<8x1xf32>
    %22 = arith.subf %18, %21 : vector<8x1xf32>
    %cst_8 = arith.constant -0.896774172 : f32
    %23 = vector.broadcast %cst_8 : f32 to vector<8x1xf32>
    %24 = arith.mulf %23, %19 : vector<8x1xf32>
    %cst_9 = arith.constant -0.0032258064 : f32
    %25 = vector.broadcast %cst_9 : f32 to vector<8x1xf32>
    %26 = arith.mulf %25, %22 : vector<8x1xf32>
    %27 = arith.addf %24, %26 : vector<8x1xf32>
    %28 = tpu.iota {dimensions = array<i32: 0>} : vector<8x1xi32>
    %c8_i32 = arith.constant 8 : i32
    %29 = arith.muli %arg0, %c8_i32 : i32
    %30 = vector.broadcast %29 : i32 to vector<8x1xi32>
    %31 = arith.addi %28, %30 : vector<8x1xi32>
    %c8_i32_10 = arith.constant 8 : i32
    %32 = vector.broadcast %c8_i32_10 : i32 to vector<8x1xi32>
    %33 = arith.cmpi slt, %31, %32 : vector<8x1xi32>
    %cst_11 = arith.constant 0.000000e+00 : f32
    %34 = vector.broadcast %cst_11 : f32 to vector<8x1xf32>
    %35 = arith.select %33, %27, %34 : vector<8x1xi1>, vector<8x1xf32>
    %c0_12 = arith.constant 0 : index
    %c0_13 = arith.constant 0 : index
    %36 = vector.load %arg3[%c0_12, %c0_13] : memref<8x1xf32, #tpu.memory_space<vmem>>, vector<8x1xf32>
    tpu.vector_store %arg3[%c0_12, %c0_13], %35 {strides = array<i32>} : memref<8x1xf32, #tpu.memory_space<vmem>>, vector<8x1xf32>,
    return
  }
  func.func @transform_0(%arg0: i32) -> (i32, i32) {
    %c0_i32 = arith.constant 0 : i32
    %c0_i32_0 = arith.constant 0 : i32
    return %arg0, %c0_i32 : i32, i32
  }
  func.func @transform_1(%arg0: i32) -> (i32, i32) {
    %c0_i32 = arith.constant 0 : i32
    %c0_i32_0 = arith.constant 0 : i32
    return %arg0, %c0_i32 : i32, i32
  }
  func.func @transform_2(%arg0: i32) -> (i32, i32) {
    %c0_i32 = arith.constant 0 : i32
    %c0_i32_0 = arith.constant 0 : i32
    return %arg0, %c0_i32 : i32, i32
  }
}

</mosaic_0001>

<bundles_post_ra>
// kernel: tpu_custom_call.1
= control target key start
LH: loop header
LB: loop body
LE: loop exit
PB: predicated region body
PF: predicated region fallthrough
CT: control target
= control target key end

     0   :  { %vm13_vm0 = vcmask 261120   ;;  %v63_v1 = vmov 0   ;;  %v25_v10 = vlaneseq  ;;  %vm51_vm2 = vcmask 7168   ;;  %s92_s0 = inlined_call_operand.vmem [shape: f32[8,32], index: 0, kind: input, shape index: {}]   ;;  %s93_s1 = inlined_call_operand.vmem [shape: s32[8,1], index: 1, kind: input, shape index: {}]   ;;  %s94_s2 = inlined_call_operand.vmem [shape: f32[8,1], index: 2, kind: output, shape index: {}]  }
   0x1   :  { %v11_v0 = vld [vmem:[%s92_s0] sm:$0xff]  ;;  %58 = vset.pattern.permute.xlu0 %v63_v1 }
   0x2   :  { %v14_v2 = vsel %vm13_vm0, %v11_v0, -inf  ;;  %v12_v3 = vld [vmem:[%s93_s1] sm:$0xff]  ;;  %v26_v11 = vand.u32 127, %v25_v10 }
   0x3   :  { %15 = vmax.xlane.f32.xlu0 %v14_v2 }
  0x17   :  { %28 = vperm.xlu0 %58, %v12_v3  }
  0x76   :  { %v16_v4 = vpop.xlane.xlu0 %15 }
  0x77   :  { %v17_v5 = vsub.f32 %v11_v0, %v16_v4 }
  0x79   :  { %v18_v6 = vmul.f32 1.442695, %v17_v5  ;;  %v35_v7 = vsel %vm13_vm0, %v17_v5, 0.0 }
  0x7a   :  { %36 = vadd.xlane.f32.xlu2 %v35_v7 }
  0x7b   :  { %59 = vpow2.f32 %v18_v6 }
  0x81   :  { %v60_v8 = vpop.eup %59 }
  0x82   :  { %v20_v9 = vsel %vm13_vm0, %v60_v8, 0.0 }
  0x83   :  { %21 = vadd.xlane.f32.xlu1 %v20_v9 }
  0x89   :  { %v29_v12 = vpop.permute.xlu0 %28 }
  0x8a   :  { %vm30_vm1 = vcmp.eq.s32.totalorder %v26_v11, %v29_v12 }
  0x8b   :  { %v31_v13 = vsel %vm30_vm1, %v17_v5, 0.0 }
  0x8c   :  { %v32_v14 = vsel %vm13_vm0, %v31_v13, 0.0 }
  0x8d   :  { %33 = vadd.xlane.f32.xlu1 %v32_v14 }
  0xed   :  { %v37_v20 = vpop.xlane.xlu2 %36 }
  0xf6   :  { %v22_v15 = vpop.xlane.xlu1 %21 }
  0xf7   :  { %61 = vlog2.f32 %v22_v15 }
  0xfd   :  { %v62_v16 = vpop.eup %61 }
  0xfe   :  { %v24_v17 = vmul.f32 0.6931472, %v62_v16 }
 0x100   :  { %v39_v18 = vmul.f32 32.0, %v24_v17  ;;  %v34_v19 = vpop.xlane.xlu1 %33 }
 0x101   :  { %v38_v21 = vsub.f32 %v34_v19, %v24_v17 }
 0x102   :  { %v40_v22 = vsub.f32 %v37_v20, %v39_v18 }
 0x103   :  { %v41_v23 = vmul.f32 -0.8967742, %v38_v21 }
 0x104   :  { %v42_v24 = vmul.f32 -0.0032258064, %v40_v22 }
 0x106   :  { %v43_v25 = vadd.f32 %v42_v24, %v41_v23 }
 0x108   :  { %52 = vst.msk [vmem:[%s94_s2] sm:$0xff] %vm51_vm2, %v43_v25 }

</bundles_post_ra>
